<compile_context>
chip_gen: v6e
topology: v6e:2x2x1
jax: 0.10.0
libtpu: 0.0.40
codegen_flags: <defaults>
</compile_context>

<pallas_src>
import jax
import jax.numpy as jnp
from jax.experimental import pallas as pl
from jax.experimental.pallas import tpu as pltpu


def watermark_encoder_kernel(m_ref, w1_ref, b1_ref, w2_ref, b2_ref,
                             gmu_ref, gsig_ref, out_mu_ref, out_sig_ref):
    # fc[0]: Linear(msg_length -> 128) + ReLU   (bf16 x bf16 -> f32 accum)
    h = jnp.dot(m_ref[...], w1_ref[...],
                preferred_element_type=jnp.float32) + b1_ref[...]
    h = jnp.maximum(h, 0.0)

    # fc[2]: Linear(128 -> latent_dim)          (bf16 x bf16 -> f32 accum)
    z = jnp.dot(h.astype(jnp.bfloat16), w2_ref[...],
                preferred_element_type=jnp.float32) + b2_ref[...]

    # tanh and Hessian-sensitivity scaling (f32 VPU/EUP)
    enc = jnp.tanh(z)
    out_mu_ref[...] = enc * gmu_ref[...]
    out_sig_ref[...] = enc * gsig_ref[...]


def watermark_encoder(m, w1, b1, w2, b2, gamma_mu, gamma_sigma, *, block_b=128):
    """m: (B, msg_length) int/float message bits.
    w1: (msg_length, 128), w2: (128, latent_dim) (in_features, out_features).
    Returns (enc * gamma_mu, enc * gamma_sigma), each (B, latent_dim) f32."""
    # One-time wrapper-side casts: bf16 operands for the MXU, f32 add/scale terms.
    m = m.astype(jnp.bfloat16)
    w1 = w1.astype(jnp.bfloat16)
    w2 = w2.astype(jnp.bfloat16)
    b1 = b1.astype(jnp.float32).reshape(1, -1)
    b2 = b2.astype(jnp.float32).reshape(1, -1)
    gamma_mu = gamma_mu.astype(jnp.float32).reshape(1, -1)
    gamma_sigma = gamma_sigma.astype(jnp.float32).reshape(1, -1)

    B, K = m.shape
    latent_dim = w2.shape[1]

    # Batch tile: multiple of 8 sublanes; pad B so the grid divides evenly.
    if B >= block_b:
        TB = block_b
    else:
        TB = max(8, ((B + 7) // 8) * 8)
    B_pad = ((B + TB - 1) // TB) * TB
    if B_pad != B:
        m = jnp.pad(m, ((0, B_pad - B), (0, 0)))

    grid = (B_pad // TB,)

    out_shape = (
        jax.ShapeDtypeStruct((B_pad, latent_dim), jnp.float32),
        jax.ShapeDtypeStruct((B_pad, latent_dim), jnp.float32),
    )

    batch_spec = lambda cols: pl.BlockSpec((TB, cols), lambda i: (i, 0))
    resident = lambda shape: pl.BlockSpec(shape, lambda i: (0, 0))

    out_mu, out_sig = pl.pallas_call(
        watermark_encoder_kernel,
        out_shape=out_shape,
        grid=grid,
        in_specs=[
            batch_spec(K),            # m tile, marches over batch
            resident(w1.shape),       # weights & small vectors stay resident
            resident(b1.shape),
            resident(w2.shape),
            resident(b2.shape),
            resident(gamma_mu.shape),
            resident(gamma_sigma.shape),
        ],
        out_specs=(
            batch_spec(latent_dim),
            batch_spec(latent_dim),
        ),
        compiler_params=pltpu.CompilerParams(
            dimension_semantics=("parallel",)),
    )(m, w1, b1, w2, b2, gamma_mu, gamma_sigma)

    if B_pad != B:
        out_mu = out_mu[:B]
        out_sig = out_sig[:B]
    return out_mu, out_sig


if __name__ == "__main__":
    msg_length = 64
    hidden = 128
    latent_dim = 256
    batch = 256  # batch >= 128 amortizes fixed kernel cost and fills MXU rows

    key = jax.random.PRNGKey(0)
    k_m, k_w1, k_b1, k_w2, k_b2 = jax.random.split(key, 5)

    # watermark message bits (int in the PyTorch module; m.float() there)
    m = jax.random.bernoulli(k_m, 0.5, (batch, msg_length)).astype(jnp.int32)

    # Deterministic parameter init (PyTorch Linear default-like uniform range),
    # stored as (in_features, out_features) so the kernel does x @ W + b.
    lim1 = 1.0 / (msg_length ** 0.5)
    w1 = jax.random.uniform(k_w1, (msg_length, hidden), jnp.float32, -lim1, lim1)
    b1 = jax.random.uniform(k_b1, (hidden,), jnp.float32, -lim1, lim1)
    lim2 = 1.0 / (hidden ** 0.5)
    w2 = jax.random.uniform(k_w2, (hidden, latent_dim), jnp.float32, -lim2, lim2)
    b2 = jax.random.uniform(k_b2, (latent_dim,), jnp.float32, -lim2, lim2)

    # Registered buffers: ones(latent_dim)
    gamma_mu = jnp.ones((latent_dim,), jnp.float32)
    gamma_sigma = jnp.ones((latent_dim,), jnp.float32)

    out_mu, out_sigma = watermark_encoder(m, w1, b1, w2, b2, gamma_mu, gamma_sigma)
    jax.block_until_ready((out_mu, out_sigma))

    # Reference check in plain f32 JAX (kernel uses bf16 MXU operands with f32
    # accumulation, so loosen the tolerance accordingly).
    enc_ref = jnp.tanh(
        jnp.maximum(m.astype(jnp.float32) @ w1 + b1[None, :], 0.0) @ w2 + b2[None, :]
    )
    assert out_mu.shape == (batch, latent_dim)
    assert out_sigma.shape == (batch, latent_dim)
    assert jnp.allclose(out_mu, enc_ref * gamma_mu[None, :], atol=2e-2, rtol=2e-2)
    assert jnp.allclose(out_sigma, enc_ref * gamma_sigma[None, :], atol=2e-2, rtol=2e-2)

    print("KERNEL_OK")
</pallas_src>

<mosaic_0001>
module attributes {stable_mosaic.version = 11 : i64} {
  func.func @watermark_encoder_kernel(%arg0: i32, %arg1: memref<128x64xbf16, #tpu.memory_space<vmem>>, %arg2: memref<64x128xbf16, #tpu.memory_space<vmem>>, %arg3: memref<1x128xf32, #tpu.memory_space<vmem>>, %arg4: memref<128x256xbf16, #tpu.memory_space<vmem>>, %arg5: memref<1x256xf32, #tpu.memory_space<vmem>>, %arg6: memref<1x256xf32, #tpu.memory_space<vmem>>, %arg7: memref<1x256xf32, #tpu.memory_space<vmem>>, %arg8: memref<128x256xf32, #tpu.memory_space<vmem>>, %arg9: memref<128x256xf32, #tpu.memory_space<vmem>>) attributes {dimension_semantics = [#tpu.dimension_semantics<parallel>], iteration_bounds = array<i64: 2>, scalar_prefetch = 0 : i64, scratch_operands = 0 : i64, tpu.core_type = #tpu.core_type<tc>, window_params = [{transform_indices = @transform_0, window_bounds = array<i64: 128, 64>}, {pipeline_mode = #tpu.pipeline_mode<synchronous>, transform_indices = @transform_1, window_bounds = array<i64: 64, 128>}, {pipeline_mode = #tpu.pipeline_mode<synchronous>, transform_indices = @transform_2, window_bounds = array<i64: 1, 128>}, {pipeline_mode = #tpu.pipeline_mode<synchronous>, transform_indices = @transform_3, window_bounds = array<i64: 128, 256>}, {pipeline_mode = #tpu.pipeline_mode<synchronous>, transform_indices = @transform_4, window_bounds = array<i64: 1, 256>}, {pipeline_mode = #tpu.pipeline_mode<synchronous>, transform_indices = @transform_5, window_bounds = array<i64: 1, 256>}, {pipeline_mode = #tpu.pipeline_mode<synchronous>, transform_indices = @transform_6, window_bounds = array<i64: 1, 256>}, {transform_indices = @transform_7, window_bounds = array<i64: 128, 256>}, {transform_indices = @transform_8, window_bounds = array<i64: 128, 256>}]} {
    %c0 = arith.constant 0 : index
    %c0_0 = arith.constant 0 : index
    %0 = vector.load %arg1[%c0, %c0_0] : memref<128x64xbf16, #tpu.memory_space<vmem>>, vector<128x64xbf16>
    %c0_1 = arith.constant 0 : index
    %c0_2 = arith.constant 0 : index
    %1 = vector.load %arg2[%c0_1, %c0_2] : memref<64x128xbf16, #tpu.memory_space<vmem>>, vector<64x128xbf16>
    %cst = arith.constant dense<0.000000e+00> : vector<128x128xf32>
    %2 = tpu.matmul %0, %1, %cst {dimension_numbers = #tpu.dot_dimension_numbers<[1], [0], [0], [1], [0, 0, 1, 1], [], []>} : vector<128x64xbf16>, vector<64x128xbf16>, vector<128x128xf32> -> vector<128x128xf32>
    %c0_3 = arith.constant 0 : index
    %c0_4 = arith.constant 0 : index
    %3 = vector.load %arg3[%c0_3, %c0_4] : memref<1x128xf32, #tpu.memory_space<vmem>>, vector<1x128xf32>
    %4 = vector.broadcast %3 : vector<1x128xf32> to vector<128x128xf32>
    %5 = arith.addf %2, %4 : vector<128x128xf32>
    %cst_5 = arith.constant 0.000000e+00 : f32
    %6 = vector.broadcast %cst_5 : f32 to vector<128x128xf32>
    %7 = arith.maximumf %5, %6 : vector<128x128xf32>
    %8 = arith.truncf %7 : vector<128x128xf32> to vector<128x128xbf16>
    %c0_6 = arith.constant 0 : index
    %c0_7 = arith.constant 0 : index
    %9 = vector.load %arg4[%c0_6, %c0_7] : memref<128x256xbf16, #tpu.memory_space<vmem>>, vector<128x256xbf16>
    %cst_8 = arith.constant dense<0.000000e+00> : vector<128x256xf32>
    %10 = tpu.matmul %8, %9, %cst_8 {dimension_numbers = #tpu.dot_dimension_numbers<[1], [0], [0], [1], [0, 0, 1, 1], [], []>} : vector<128x128xbf16>, vector<128x256xbf16>, vector<128x256xf32> -> vector<128x256xf32>
    %c0_9 = arith.constant 0 : index
    %c0_10 = arith.constant 0 : index
    %11 = vector.load %arg5[%c0_9, %c0_10] : memref<1x256xf32, #tpu.memory_space<vmem>>, vector<1x256xf32>
    %12 = vector.broadcast %11 : vector<1x256xf32> to vector<128x256xf32>
    %13 = arith.addf %10, %12 : vector<128x256xf32>
    %14 = math.tanh %13 : vector<128x256xf32>
    %c0_11 = arith.constant 0 : index
    %c0_12 = arith.constant 0 : index
    %15 = vector.load %arg6[%c0_11, %c0_12] : memref<1x256xf32, #tpu.memory_space<vmem>>, vector<1x256xf32>
    %16 = vector.broadcast %15 : vector<1x256xf32> to vector<128x256xf32>
    %17 = arith.mulf %14, %16 : vector<128x256xf32>
    %c0_13 = arith.constant 0 : index
    %c0_14 = arith.constant 0 : index
    %18 = vector.load %arg8[%c0_13, %c0_14] : memref<128x256xf32, #tpu.memory_space<vmem>>, vector<128x256xf32>
    tpu.vector_store %arg8[%c0_13, %c0_14], %17 {strides = array<i32>} : memref<128x256xf32, #tpu.memory_space<vmem>>, vector<128x256xf32>,
    %c0_15 = arith.constant 0 : index
    %c0_16 = arith.constant 0 : index
    %19 = vector.load %arg7[%c0_15, %c0_16] : memref<1x256xf32, #tpu.memory_space<vmem>>, vector<1x256xf32>
    %20 = vector.broadcast %19 : vector<1x256xf32> to vector<128x256xf32>
    %21 = arith.mulf %14, %20 : vector<128x256xf32>
    %c0_17 = arith.constant 0 : index
    %c0_18 = arith.constant 0 : index
    %22 = vector.load %arg9[%c0_17, %c0_18] : memref<128x256xf32, #tpu.memory_space<vmem>>, vector<128x256xf32>
    tpu.vector_store %arg9[%c0_17, %c0_18], %21 {strides = array<i32>} : memref<128x256xf32, #tpu.memory_space<vmem>>, vector<128x256xf32>,
    return
  }
  func.func @transform_0(%arg0: i32) -> (i32, i32) {
    %c0_i32 = arith.constant 0 : i32
    %c0_i32_0 = arith.constant 0 : i32
    return %arg0, %c0_i32 : i32, i32
  }
  func.func @transform_1(%arg0: i32) -> (i32, i32) {
    %c0_i32 = arith.constant 0 : i32
    %c0_i32_0 = arith.constant 0 : i32
    %c0_i32_1 = arith.constant 0 : i32
    return %c0_i32, %c0_i32_0 : i32, i32
  }
  func.func @transform_2(%arg0: i32) -> (i32, i32) {
    %c0_i32 = arith.constant 0 : i32
    %c0_i32_0 = arith.constant 0 : i32
    %c0_i32_1 = arith.constant 0 : i32
    return %c0_i32, %c0_i32_0 : i32, i32
  }
  func.func @transform_3(%arg0: i32) -> (i32, i32) {
    %c0_i32 = arith.constant 0 : i32
    %c0_i32_0 = arith.constant 0 : i32
    %c0_i32_1 = arith.constant 0 : i32
    return %c0_i32, %c0_i32_0 : i32, i32
  }
  func.func @transform_4(%arg0: i32) -> (i32, i32) {
    %c0_i32 = arith.constant 0 : i32
    %c0_i32_0 = arith.constant 0 : i32
    %c0_i32_1 = arith.constant 0 : i32
    return %c0_i32, %c0_i32_0 : i32, i32
  }
  func.func @transform_5(%arg0: i32) -> (i32, i32) {
    %c0_i32 = arith.constant 0 : i32
    %c0_i32_0 = arith.constant 0 : i32
    %c0_i32_1 = arith.constant 0 : i32
    return %c0_i32, %c0_i32_0 : i32, i32
  }
  func.func @transform_6(%arg0: i32) -> (i32, i32) {
    %c0_i32 = arith.constant 0 : i32
    %c0_i32_0 = arith.constant 0 : i32
    %c0_i32_1 = arith.constant 0 : i32
    return %c0_i32, %c0_i32_0 : i32, i32
  }
  func.func @transform_7(%arg0: i32) -> (i32, i32) {
    %c0_i32 = arith.constant 0 : i32
    %c0_i32_0 = arith.constant 0 : i32
    return %arg0, %c0_i32 : i32, i32
  }
  func.func @transform_8(%arg0: i32) -> (i32, i32) {
    %c0_i32 = arith.constant 0 : i32
    %c0_i32_0 = arith.constant 0 : i32
    return %arg0, %c0_i32 : i32, i32
  }
}

</mosaic_0001>

<bundles_post_ra>
// kernel: tpu_custom_call.1
= control target key start
LH: loop header
LB: loop body
LE: loop exit
PB: predicated region body
PF: predicated region fallthrough
CT: control target
= control target key end

     0   :  { %s1911_s0 = inlined_call_operand.vmem [shape: bf16[256,64], index: 0, kind: input, shape index: {}]   ;;  %s1912_s1 = inlined_call_operand.vmem [shape: bf16[64,128], index: 1, kind: input, shape index: {}]   ;;  %s1913_s2 = inlined_call_operand.vmem [shape: f32[1,128], index: 2, kind: input, shape index: {}]   ;;  %s1914_s3 = inlined_call_operand.vmem [shape: bf16[128,256], index: 3, kind: input, shape index: {}]   ;;  %s1915_s4 = inlined_call_operand.vmem [shape: f32[1,256], index: 4, kind: input, shape index: {}]   ;;  %s1916_s5 = inlined_call_operand.vmem [shape: f32[1,256], index: 5, kind: input, shape index: {}]   ;;  %s1917_s6 = inlined_call_operand.vmem [shape: f32[1,256], index: 6, kind: input, shape index: {}]   ;;  %s1918_s7 = inlined_call_operand.hbm [shape: f32[256,256], index: 7, kind: output, shape index: {0}]   ;;  %s1919_s8 = inlined_call_operand.hbm [shape: f32[256,256], index: 8, kind: output, shape index: {1}]  }
   0x1   :  { %1920 = sst [smem:[#allocation8_spill]] %s1911_s0 }
   0x2   :  { %14 = vsyncpa [#allocation3], 0 }
   0x3   :  { %16 = vsyncpa [#allocation3 + $0x1], 0 }
   0x4   :  { %17 = vsyncpa [#allocation5], 0 }
   0x5   :  { %19 = vsyncpa [#allocation5 + $0x1], 0  ;;  %s1497_s27 = smov 0   ;;  %s1499_s28 = smov 0  }
   0x6   :  { %s1501_s29 = smov 0   ;;  %s1503_s30 = smov 0  }
   0x7 LB: > { %s1518_s9 = sadd.s32 4294967295, %s1445_s30   ;;  %s1097_s10 = sadd.s32 4294967294, %s1445_s30   ;;  %s1445_s30 = sphi %s1503_s30, %s1927_s30   ;;  %s1441_s29 = sphi %s1501_s29, %s1926_s29   ;;  %s1437_s28 = sphi %s1499_s28, %s1925_s28   ;;  %s1433_s27 = sphi %s1497_s27, %s1924_s27  }
   0x8   : > { %s1522_s11 = sadd.s32 1, %s1445_s30   ;;  %s184_s12 = sadd.s32 1, %s1441_s29 }
   0x9   : > { %s181_s13 = ssub.s32 %s1445_s30, %s1522_s11  ;;  %p194_p0 = scmp.ne.s32.totalorder %s1441_s29, %s1437_s28 }
   0xa   : > { %p182_p1 = scmp.eq.s32.totalorder %s181_s13, 0  ;;  %p195_p2 = scmp.eq.s32.totalorder %s1518_s9, 1 }
   0xb   : > { %p200_p3 = scmp.ne.s32.totalorder %s1437_s28, %s1433_s27  ;;  %p201_p4 = scmp.eq.s32.totalorder %s1097_s10, 1 }
   0xc   : > { %s1533_s14 = scalar_select %p182_p1, %s1441_s29, %s184_s12  }
   0xd   : > { %p1535_p5 = por %p195_p2, %p194_p0  ;;  %p1539_p6 = por %p201_p4, %p200_p3 }
   0xe   : > { %p1100_p7 = scmp.ge.s32.totalorder %s1445_s30, 1  ;;  %p272_p8 = scmp.lt.s32.totalorder %s1445_s30, 3 }
  0x10   : > { %p273_p9 = pnand %p1100_p7, %p272_p8 }
  0x11   : > { %s1103_s19 = sshll.u32 (!%p273_p9), %s1518_s9, 4  ;;  %s1923_s0 = sld [smem:[#allocation8_spill]] (!%p273_p9) }
  0x12   : > { %276 = sbr.rel (%p273_p9) target bundleno = 539 (0x21b), region = 48  ;;  %p312_p10 = scmp.lt.s32.totalorder (!%p273_p9), %s1103_s19, 31 }
  0x13   : > { %s1656_s18 = sand.u32 (!%p273_p9), 1, %s1437_s28   ;;  %s1153_s23 = sshll.u32 (!%p273_p9), %s1518_s9, 12 }
  0x14   : > { %s1101_s21 = sshll.u32 (!%p273_p9), %s1656_s18, 8  ;;  %s1826_s26 = scalar_lea.hbm (!%p273_p9), %s1918_s7, %s1153_s23 }
  0x15   : > { %s1682_s22 = scalar_lea.vmem (!%p273_p9), [#allocation4], %s1101_s21  ;;  %s1838_s20 = scalar_lea.hbm (!%p273_p9), %s1919_s8, %s1153_s23 }
  0x16   : > { %s1003_s10 = sshll.u32 (!%p273_p9), %s1682_s22, 4  ;;  %s1448_s25 = smov (!%p273_p9), [#allocation2]   ;;  %s1840_s10 = int_to_ptr.vmem [resolvable:$true] %s1003_s10 }
  0x17   : > { %v1255_v0 = vld [vmem:[%s1912_s1 + $0x18] sm:$0xff]   ;;  %v1256_v1 = vld [vmem:[%s1912_s1 + $0x10] sm:$0xff]   ;;  %s1929_s19 = smov (!%p312_p10, %s1103_s19), 31  ;;  %v1257_v2 = vld [vmem:[%s1912_s1 + $0x8] sm:$0xff]   ;;  %vm415_vm0 = vcmask 523264   ;;  %v1447_v28 = vmov 0  }
  0x18   : > { %1168 = vmatprep.subr.bf16.mxu0 %v1255_v0  ;;  %s1104_s24 = sshll.u32 %s1929_s19, 2  ;;  %v1269_v3 = vld [vmem:[%s1914_s3 + $0x74] ss:$8 sps:$4 sm:$0xff]   ;;  %v1267_v4 = vld [vmem:[%s1914_s3 + $0x70] ss:$8 sps:$4 sm:$0xff]   ;;  %v1258_v7 = vld [vmem:[%s1912_s1] sm:$0xff]   ;;  %731 = vmatprep.mubr.bf16.mxu1 %v1447_v28 }
  0x19   : > { %1169 = vmatpush3.bf16.msra.mxu0 %v1255_v0  ;;  %s1561_s13 = scalar_lea.vmem %s1923_s0, %s1104_s24  ;;  %v1272_v5 = vld [vmem:[%s1914_s3 + $0x64] ss:$8 sps:$4 sm:$0xff]   ;;  %1192 = vmatprep.subr.bf16.mxu1 %v1269_v3  ;;  %v1270_v8 = vld [vmem:[%s1914_s3 + $0x60] ss:$8 sps:$4 sm:$0xff]   ;;  %v1275_v11 = vld [vmem:[%s1914_s3 + $0x54] ss:$8 sps:$4 sm:$0xff]  }
  0x1a   : > { %1170 = vmatprep.subr.bf16.mxu0 %v1256_v1  ;;  %v1259_v6 = vld [vmem:[%s1561_s13] sm:$0xff]   ;;  %1200 = vmatpush1.bf16.msra.mxu1 %v1267_v4  ;;  %v1260_v9 = vld [vmem:[%s1561_s13 + $0x8] sm:$0xff]   ;;  %v1261_v10 = vld [vmem:[%s1561_s13 + $0x10] sm:$0xff]   ;;  %s1679_s19 = scalar_lea.vmem [#allocation2], %s1101_s21  ;;  %s1359_s9 = sshll.u32 %s1448_s25, 4  ;;  %s1360_s9 = int_to_ptr.vmem [resolvable:$false] %s1359_s9 }
  0x1b   : > { %1176 = vmatprep.mubr.msk.bf16.mxu0 %vm415_vm0, %v1259_v6  ;;  %1193 = vmatprep.subr.bf16.mxu1 %v1272_v5  ;;  %v1273_v12 = vld [vmem:[%s1914_s3 + $0x50] ss:$8 sps:$4 sm:$0xff]   ;;  %v1278_v13 = vld [vmem:[%s1914_s3 + $0x44] ss:$8 sps:$4 sm:$0xff]   ;;  %v1276_v14 = vld [vmem:[%s1914_s3 + $0x40] ss:$8 sps:$4 sm:$0xff]  }
  0x1c   : > { %v1281_v15 = vld [vmem:[%s1914_s3 + $0x34] ss:$8 sps:$4 sm:$0xff]   ;;  %v1263_v17 = vld [vmem:[%s1561_s13 + $0x20] sm:$0xff]   ;;  %v1279_v18 = vld [vmem:[%s1914_s3 + $0x30] ss:$8 sps:$4 sm:$0xff]   ;;  %s986_s24 = sshll.u32 %s1679_s19, 4  ;;  %s1829_s24 = int_to_ptr.vmem [resolvable:$true] %s986_s24 }
  0x1d   : > { %1171 = vmatpush3.bf16.msra.mxu0 %v1256_v1  ;;  %v1262_v16 = vld [vmem:[%s1561_s13 + $0x18] sm:$0xff]   ;;  %v1264_v19 = vld [vmem:[%s1561_s13 + $0x28] sm:$0xff]   ;;  %v1265_v20 = vld [vmem:[%s1561_s13 + $0x30] sm:$0xff]   ;;  %s1355_s21 = scalar_lea.vmem %s1829_s24, 4096  ;;  %s1361_s0 = scalar_lea.vmem %s1360_s9, 8192 }
  0x1e   : > { %1172 = vmatprep.subr.bf16.mxu0 %v1257_v2  ;;  %1201 = vmatpush1.bf16.msra.mxu1 %v1270_v8  ;;  %v1266_v21 = vld [vmem:[%s1561_s13 + $0x38] sm:$0xff]   ;;  %v1284_v22 = vld [vmem:[%s1914_s3 + $0x24] ss:$8 sps:$4 sm:$0xff]   ;;  %v1282_v23 = vld [vmem:[%s1914_s3 + $0x20] ss:$8 sps:$4 sm:$0xff]   ;;  %s967_s13 = scalar_lea.sflag [#allocation3], %s1656_s18  ;;  %p1356_p11 = scmp.ne.s32.totalorder %s1829_s24, %s1355_s21 }
  0x1f   : > { %1194 = vmatprep.subr.bf16.mxu1 %v1275_v11  ;;  %v1287_v24 = vld [vmem:[%s1914_s3 + $0x14] ss:$8 sps:$4 sm:$0xff]   ;;  %v1285_v25 = vld [vmem:[%s1914_s3 + $0x10] ss:$8 sps:$4 sm:$0xff]   ;;  %v1290_v26 = vld [vmem:[%s1914_s3 + $0x4] ss:$8 sps:$4 sm:$0xff]   ;;  %p1362_p0 = scmp.lt.s32.totalorder %s1829_s24, %s1360_s9  ;;  %p1363_p1 = scmp.lt.s32.totalorder %s1361_s0, %s1355_s21 }
  0x20   : > { %v1288_v27 = vld [vmem:[%s1914_s3] ss:$8 sps:$4 sm:$0xff]   ;;  %p1357_p12 = pnand %p1356_p11, %p1535_p5 }
  0x21   : > { %1173 = vmatpush3.bf16.msra.mxu0 %v1257_v2  ;;  %v1105_v31 = vld [vmem:[%s1913_s2] ss:$0 sm:$0xff]  ;;  %p1364_p2 = por %p1363_p1, %p1362_p0 }
  0x22   : > { %1174 = vmatprep.subr.bf16.mxu0 %v1258_v7  ;;  %1202 = vmatpush1.bf16.msra.mxu1 %v1273_v12  ;;  %p1358_p13 = pneg %p1357_p12 }
  0x23   : > { %1195 = vmatprep.subr.bf16.mxu1 %v1278_v13 }
  0x24   : > { %p1365_p3 = pnand %p1364_p2, %p1358_p13 }
  0x25   : > { %1175 = vmatpush3.bf16.msra.mxu0 %v1258_v7 }
  0x26   : > { %669 = vmatprep.subr.bf16.mxu0 %v1269_v3  ;;  %1203 = vmatpush1.bf16.msra.mxu1 %v1276_v14 }
  0x27   : > { %1196 = vmatprep.subr.bf16.mxu1 %v1281_v15 }
  0x28   : > { %1177 = vmatmul.mubr.msk.bf16.vlgmr.msra.gmra.mxu0 %vm415_vm0, %v1260_v9 }
  0x29   : > { %1180 = vmatprep.mubr.msk.bf16.mxu0 %vm415_vm0, %v1261_v10  ;;  %670 = vmatpush1.bf16.msra.mxu0 %v1267_v4 }
  0x2a   : > { %671 = vmatprep.subr.bf16.mxu0 %v1272_v5  ;;  %1204 = vmatpush1.bf16.msra.mxu1 %v1279_v18 }
  0x2b   : > { %1197 = vmatprep.subr.bf16.mxu1 %v1284_v22 }
  0x2d   : > { %672 = vmatpush1.bf16.msra.mxu0 %v1270_v8 }
  0x2e   : > { %673 = vmatprep.subr.bf16.mxu0 %v1275_v11  ;;  %1205 = vmatpush1.bf16.msra.mxu1 %v1282_v23 }
  0x2f   : > { %1198 = vmatprep.subr.bf16.mxu1 %v1287_v24 }
  0x30   : > { %1181 = vmatmul.mubr.msk.bf16.gmra.mxu0 %vm415_vm0, %v1262_v16 }
  0x31   : > { %1184 = vmatprep.mubr.msk.bf16.mxu0 %vm415_vm0, %v1263_v17  ;;  %674 = vmatpush1.bf16.msra.mxu0 %v1273_v12 }
  0x32   : > { %675 = vmatprep.subr.bf16.mxu0 %v1278_v13  ;;  %1206 = vmatpush1.bf16.msra.mxu1 %v1285_v25 }
  0x33   : > { %1199 = vmatprep.subr.bf16.mxu1 %v1290_v26 }
  0x35   : > { %676 = vmatpush1.bf16.msra.mxu0 %v1276_v14 }
  0x36   : > { %677 = vmatprep.subr.bf16.mxu0 %v1281_v15  ;;  %1207 = vmatpush1.bf16.msra.mxu1 %v1288_v27 }
  0x38   : > { %1185 = vmatmul.mubr.msk.bf16.gmra.mxu0 %vm415_vm0, %v1264_v19 }
  0x39   : > { %1188 = vmatprep.mubr.msk.bf16.mxu0 %vm415_vm0, %v1265_v20  ;;  %678 = vmatpush1.bf16.msra.mxu0 %v1279_v18 }
  0x3a   : > { %679 = vmatprep.subr.bf16.mxu0 %v1284_v22  ;;  %v579_v22 = vlaneseq }
  0x3d   : > { %680 = vmatpush1.bf16.msra.mxu0 %v1282_v23  ;;  %v580_v23 = vshrl.u32 %v579_v22, 7 }
  0x3e   : > { %681 = vmatprep.subr.bf16.mxu0 %v1287_v24 }
  0x3f   : > { %v581_v24 = vsub.s32 0, %v580_v23 }
  0x40   : > { %1189 = vmatmul.mubr.msk.bf16.gmra.mxu0 %vm415_vm0, %v1266_v21 }
  0x41   : > { %682 = vmatpush1.bf16.msra.mxu0 %v1285_v25  ;;  %701 = vmatprep.mubr.bf16.mxu0 %v1447_v28  ;;  %v577_v25 = vld [vmem:[%s1915_s4] sm:$0x3] }
  0x42   : > { %683 = vmatprep.subr.bf16.mxu0 %v1290_v26  ;;  %v585_v26 = vsub.s32 1, %v580_v23 }
  0x45   : > { %684 = vmatpush1.bf16.msra.mxu0 %v1288_v27  ;;  %v1641_v27 = vrot.slane %v577_v25, %v581_v24 }
  0xe8   : > { %v1178_v29 = vpop.f32.mrf.mxu0 }
  0xe9   : > { %v483_v44 = vadd.f32 %v1178_v29, %v1105_v31  ;;  %v1643_v29 = vrot.slane %v577_v25, %v585_v26 }
  0xea   : > { %v474_v30 = vpop.f32.mrf.mxu0 }
  0xeb   : > { %v475_v33 = vadd.f32 %v1105_v31, %v474_v30  ;;  %v539_v51 = vmax.f32 %v483_v44, 0.0  ;;  %v890_v44 = vld [vmem:[%s1917_s6] sm:$0x3] }
  0xec   : > { %v1179_v32 = vpop.f32.mrf.mxu0 }
  0xed   : > { %v537_v37 = vmax.f32 %v475_v33, 0.0  ;;  %v486_v40 = vadd.f32 %v1179_v32, %v1105_v31 }
  0xee   : > { %v477_v34 = vpop.f32.mrf.mxu0 }
  0xef   : > { %v478_v35 = vadd.f32 %v1105_v31, %v477_v34  ;;  %v540_v47 = vmax.f32 %v486_v40, 0.0 }
  0xf0   : > { %v1182_v36 = vpop.f32.mrf.mxu0 }
  0xf1   : > { %v538_v38 = vmax.f32 %v478_v35, 0.0  ;;  %v499_v42 = vadd.f32 %v1182_v36, %v1105_v31  ;;  %v554_v54 = vpack.c.bf16 %v540_v47, %v539_v51 }
  0xf2   : > { %v490_v39 = vpop.f32.mrf.mxu0 }
  0xf3   : > { %v553_v41 = vpack.c.bf16 %v538_v38, %v537_v37  ;;  %v543_v48 = vmax.f32 %v499_v42, 0.0  ;;  %v491_v57 = vadd.f32 %v1105_v31, %v490_v39 }
  0xf4   : > { %v1183_v43 = vpop.f32.mrf.mxu0 }
  0xf5   : > { %v502_v45 = vadd.f32 %v1183_v43, %v1105_v31  ;;  %702 = vmatmul.mubr.bf16.vlgmr.msra.gmra.mxu0 %v553_v41  ;;  %v541_v63 = vmax.f32 %v491_v57, 0.0  ;;  %v814_v41 = vld [vmem:[%s1916_s5] sm:$0x3]  ;;  %v1672_v57 = vrot.slane %v890_v44, %v585_v26 }
  0xf6   : > { %v493_v46 = vpop.f32.mrf.mxu0  ;;  %711 = vmatprep.mubr.bf16.mxu0 %v1447_v28 }
  0xf7   : > { %v544_v49 = vmax.f32 %v502_v45, 0.0  ;;  %v494_v55 = vadd.f32 %v1105_v31, %v493_v46 }
  0xf8   : > { %v1186_v50 = vpop.f32.mrf.mxu0 }
  0xf9   : > { %v556_v52 = vpack.c.bf16 %v544_v49, %v543_v48  ;;  %v542_v60 = vmax.f32 %v494_v55, 0.0  ;;  %v515_v7 = vadd.f32 %v1186_v50, %v1105_v31  ;;  %v1663_v49 = vrot.slane %v814_v41, %v581_v24 }
  0xfa   : > { %v506_v53 = vpop.f32.mrf.mxu0 }
  0xfb   : > { %732 = vmatmul.mubr.bf16.vlgmr.msra.gmra.mxu1 %v556_v52  ;;  %v507_v58 = vadd.f32 %v1105_v31, %v506_v53  ;;  %v555_v3 = vpack.c.bf16 %v542_v60, %v541_v63  ;;  %v547_v10 = vmax.f32 %v515_v7, 0.0  ;;  %v1666_v52 = vrot.slane %v890_v44, %v581_v24 }
  0xfc   : > { %v1187_v56 = vpop.f32.mrf.mxu0  ;;  %741 = vmatprep.mubr.bf16.mxu1 %v1447_v28 }
  0xfd   : > { %712 = vmatmul.mubr.bf16.gmra.mxu0 %v554_v54  ;;  %v545_v0 = vmax.f32 %v507_v58, 0.0  ;;  %v518_v4 = vadd.f32 %v1187_v56, %v1105_v31  ;;  %v1670_v56 = vrot.slane %v814_v41, %v585_v26 }
  0xfe   : > { %v509_v59 = vpop.f32.mrf.mxu0  ;;  %721 = vmatprep.mubr.bf16.mxu0 %v1447_v28 }
  0xff   : > { %v510_v61 = vadd.f32 %v1105_v31, %v509_v59  ;;  %v548_v8 = vmax.f32 %v518_v4, 0.0 }
 0x100   : > { %v1190_v62 = vpop.f32.mrf.mxu0 }
 0x101   : > { %v546_v1 = vmax.f32 %v510_v61, 0.0  ;;  %v558_v11 = vpack.c.bf16 %v548_v8, %v547_v10  ;;  %v531_v16 = vadd.f32 %v1190_v62, %v1105_v31 }
 0x102   : > { %v522_v2 = vpop.f32.mrf.mxu0 }
 0x103   : > { %v557_v5 = vpack.c.bf16 %v546_v1, %v545_v0  ;;  %v523_v12 = vadd.f32 %v1105_v31, %v522_v2  ;;  %v551_v19 = vmax.f32 %v531_v16, 0.0 }
 0x104   : > { %v1191_v6 = vpop.f32.mrf.mxu0 }
 0x105   : > { %722 = vmatmul.mubr.bf16.gmra.mxu0 %v555_v3  ;;  %742 = vmatmul.mubr.bf16.gmra.mxu1 %v557_v5  ;;  %v549_v14 = vmax.f32 %v523_v12, 0.0  ;;  %v534_v17 = vadd.f32 %v1191_v6, %v1105_v31 }
 0x106   : > { %751 = vmatprep.mubr.bf16.mxu1 %v1447_v28  ;;  %v525_v9 = vpop.f32.mrf.mxu0 }
 0x107   : > { %v526_v13 = vadd.f32 %v1105_v31, %v525_v9  ;;  %v552_v20 = vmax.f32 %v534_v17, 0.0 }
 0x109   : > { %v550_v15 = vmax.f32 %v526_v13, 0.0  ;;  %v560_v21 = vpack.c.bf16 %v552_v20, %v551_v19 }
 0x10b   : > { %v559_v18 = vpack.c.bf16 %v550_v15, %v549_v14 }
 0x10d   : > { %752 = vmatmul.mubr.bf16.gmra.mxu1 %v558_v11 }
 0x10e   : > { %761 = vmatprep.mubr.bf16.mxu1 %v1447_v28 }
 0x115   : > { %762 = vmatmul.mubr.bf16.gmra.mxu1 %v559_v18 }
 0x116   : > { %771 = vmatprep.mubr.bf16.mxu1 %v1447_v28 }
 0x11d   : > { %772 = vmatmul.mubr.bf16.gmra.mxu1 %v560_v21 }
 0x1b5   : > { %v703_v30 = vpop.f32.mrf.mxu0 }
 0x1b6   : > { %v704_v31 = vadd.f32 %v703_v30, %v1641_v27 }
 0x1b7   : > { %v705_v28 = vpop.f32.mrf.mxu0 }
 0x1b8   : > { %1291 = vtanh.f32 %v704_v31  ;;  %v706_v32 = vadd.f32 %v705_v28, %v1643_v29 }
 0x1b9   : > { %v707_v33 = vpop.f32.mrf.mxu0 }
 0x1ba   : > { %1293 = vtanh.f32 %v706_v32  ;;  %v708_v34 = vadd.f32 %v707_v33, %v1641_v27 }
 0x1bb   : > { %v709_v35 = vpop.f32.mrf.mxu0  ;;  %v733_v36 = vpop.f32.mrf.mxu1 }
 0x1bc   : > { %1295 = vtanh.f32 %v708_v34  ;;  %v710_v37 = vadd.f32 %v709_v35, %v1643_v29  ;;  %v734_v38 = vadd.f32 %v733_v36, %v1641_v27 }
 0x1bd   : > { %v713_v39 = vpop.f32.mrf.mxu0  ;;  %v735_v40 = vpop.f32.mrf.mxu1 }
 0x1be   : > { %1297 = vtanh.f32 %v710_v37  ;;  %v714_v42 = vadd.f32 %v713_v39, %v1641_v27  ;;  %v736_v43 = vadd.f32 %v735_v40, %v1643_v29 }
 0x1bf   : > { %1299 = vtanh.f32 %v734_v38  ;;  %v715_v45 = vpop.f32.mrf.mxu0  ;;  %v737_v46 = vpop.f32.mrf.mxu1 }
 0x1c0   : > { %1301 = vtanh.f32 %v714_v42  ;;  %v716_v47 = vadd.f32 %v715_v45, %v1643_v29  ;;  %v738_v48 = vadd.f32 %v737_v46, %v1641_v27 }
 0x1c1   : > { %1303 = vtanh.f32 %v736_v43  ;;  %v717_v50 = vpop.f32.mrf.mxu0  ;;  %v739_v51 = vpop.f32.mrf.mxu1 }
 0x1c2   : > { %1305 = vtanh.f32 %v716_v47  ;;  %v718_v53 = vadd.f32 %v717_v50, %v1641_v27  ;;  %v740_v54 = vadd.f32 %v739_v51, %v1643_v29 }
 0x1c3   : > { %1307 = vtanh.f32 %v738_v48  ;;  %v719_v55 = vpop.f32.mrf.mxu0 }
 0x1c4   : > { %1309 = vtanh.f32 %v718_v53  ;;  %v720_v58 = vadd.f32 %v719_v55, %v1643_v29 }
 0x1c5   : > { %v1292_v59 = vpop.eup %1291  ;;  %1311 = vtanh.f32 %v740_v54  ;;  %v723_v60 = vpop.f32.mrf.mxu0 }
 0x1c6   : > { %v743_v61 = vpop.f32.mrf.mxu1  ;;  %v826_v62 = vmul.f32 %v1292_v59, %v1663_v49  ;;  %v902_v63 = vmul.f32 %v1292_v59, %v1666_v52  ;;  %1313 = vtanh.f32 %v720_v58  ;;  %v724_v0 = vadd.f32 %v723_v60, %v1641_v27 }
 0x1c7   : > { %v1294_v1 = vpop.eup %1293  ;;  %v744_v2 = vadd.f32 %v743_v61, %v1641_v27  ;;  %v725_v3 = vpop.f32.mrf.mxu0 }
 0x1c8   : > { %v745_v4 = vpop.f32.mrf.mxu1  ;;  %858 = vst [vmem:[%s1679_s19] sm:$0xff] %v826_v62  ;;  %934 = vst [vmem:[%s1682_s22] sm:$0xff] %v902_v63  ;;  %v827_v5 = vmul.f32 %v1294_v1, %v1670_v56  ;;  %v903_v6 = vmul.f32 %v1294_v1, %v1672_v57  ;;  %1315 = vtanh.f32 %v724_v0  ;;  %v726_v7 = vadd.f32 %v725_v3, %v1643_v29 }
 0x1c9   : > { %v1296_v8 = vpop.eup %1295  ;;  %1317 = vtanh.f32 %v744_v2  ;;  %v746_v9 = vadd.f32 %v745_v4, %v1643_v29  ;;  %v727_v10 = vpop.f32.mrf.mxu0 }
 0x1ca   : > { %v747_v11 = vpop.f32.mrf.mxu1  ;;  %859 = vst [vmem:[%s1679_s19 + $0x8] sm:$0xff] %v827_v5  ;;  %935 = vst [vmem:[%s1682_s22 + $0x8] sm:$0xff] %v903_v6  ;;  %v828_v12 = vmul.f32 %v1296_v8, %v1663_v49  ;;  %v904_v13 = vmul.f32 %v1296_v8, %v1666_v52  ;;  %1319 = vtanh.f32 %v726_v7  ;;  %v728_v14 = vadd.f32 %v727_v10, %v1641_v27 }
 0x1cb   : > { %v1298_v15 = vpop.eup %1297  ;;  %1321 = vtanh.f32 %v746_v9  ;;  %v748_v16 = vadd.f32 %v747_v11, %v1641_v27  ;;  %v729_v17 = vpop.f32.mrf.mxu0 }
 0x1cc   : > { %v749_v18 = vpop.f32.mrf.mxu1  ;;  %v1300_v19 = vpop.eup %1299  ;;  %860 = vst [vmem:[%s1679_s19 + $0x10] sm:$0xff] %v828_v12  ;;  %936 = vst [vmem:[%s1682_s22 + $0x10] sm:$0xff] %v904_v13  ;;  %v829_v20 = vmul.f32 %v1298_v15, %v1670_v56  ;;  %v905_v21 = vmul.f32 %v1298_v15, %v1672_v57  ;;  %1323 = vtanh.f32 %v728_v14  ;;  %v730_v22 = vadd.f32 %v729_v17, %v1643_v29 }
 0x1cd   : > { %v1302_v23 = vpop.eup %1301  ;;  %v838_v24 = vmul.f32 %v1300_v19, %v1663_v49  ;;  %v914_v25 = vmul.f32 %v1300_v19, %v1666_v52  ;;  %1325 = vtanh.f32 %v748_v16  ;;  %v750_v26 = vadd.f32 %v749_v18, %v1643_v29 }
 0x1ce   : > { %v753_v30 = vpop.f32.mrf.mxu1  ;;  %v1304_v31 = vpop.eup %1303  ;;  %861 = vst [vmem:[%s1679_s19 + $0x18] sm:$0xff] %v829_v20  ;;  %937 = vst [vmem:[%s1682_s22 + $0x18] sm:$0xff] %v905_v21  ;;  %v830_v28 = vmul.f32 %v1302_v23, %v1663_v49  ;;  %v906_v32 = vmul.f32 %v1302_v23, %v1666_v52  ;;  %1327 = vtanh.f32 %v730_v22 }
 0x1cf   : > { %v754_v33 = vadd.f32 %v753_v30, %v1641_v27  ;;  %v1306_v34 = vpop.eup %1305  ;;  %870 = vst [vmem:[%s1679_s19 + $0x60] sm:$0xff] %v838_v24  ;;  %946 = vst [vmem:[%s1682_s22 + $0x60] sm:$0xff] %v914_v25  ;;  %v839_v35 = vmul.f32 %v1304_v31, %v1670_v56  ;;  %v915_v36 = vmul.f32 %v1304_v31, %v1672_v57  ;;  %1329 = vtanh.f32 %v750_v26 }
 0x1d0   : > { %v755_v37 = vpop.f32.mrf.mxu1  ;;  %v1308_v38 = vpop.eup %1307  ;;  %862 = vst [vmem:[%s1679_s19 + $0x20] sm:$0xff] %v830_v28  ;;  %938 = vst [vmem:[%s1682_s22 + $0x20] sm:$0xff] %v906_v32  ;;  %v831_v39 = vmul.f32 %v1306_v34, %v1670_v56  ;;  %v907_v40 = vmul.f32 %v1306_v34, %v1672_v57 }
 0x1d1   : > { %1331 = vtanh.f32 %v754_v33  ;;  %v756_v41 = vadd.f32 %v755_v37, %v1643_v29  ;;  %v1310_v42 = vpop.eup %1309  ;;  %871 = vst [vmem:[%s1679_s19 + $0x68] sm:$0xff] %v839_v35  ;;  %947 = vst [vmem:[%s1682_s22 + $0x68] sm:$0xff] %v915_v36  ;;  %v840_v43 = vmul.f32 %v1308_v38, %v1663_v49  ;;  %v916_v44 = vmul.f32 %v1308_v38, %v1666_v52 }
 0x1d2   : > { %v757_v45 = vpop.f32.mrf.mxu1  ;;  %v1312_v46 = vpop.eup %1311  ;;  %863 = vst [vmem:[%s1679_s19 + $0x28] sm:$0xff] %v831_v39  ;;  %939 = vst [vmem:[%s1682_s22 + $0x28] sm:$0xff] %v907_v40  ;;  %v832_v47 = vmul.f32 %v1310_v42, %v1663_v49  ;;  %v908_v48 = vmul.f32 %v1310_v42, %v1666_v52 }
 0x1d3   : > { %1333 = vtanh.f32 %v756_v41  ;;  %v758_v50 = vadd.f32 %v757_v45, %v1641_v27  ;;  %v1314_v51 = vpop.eup %1313  ;;  %872 = vst [vmem:[%s1679_s19 + $0x70] sm:$0xff] %v840_v43  ;;  %948 = vst [vmem:[%s1682_s22 + $0x70] sm:$0xff] %v916_v44  ;;  %v841_v53 = vmul.f32 %v1312_v46, %v1670_v56  ;;  %v917_v54 = vmul.f32 %v1312_v46, %v1672_v57 }
 0x1d4   : > { %v759_v55 = vpop.f32.mrf.mxu1  ;;  %864 = vst [vmem:[%s1679_s19 + $0x30] sm:$0xff] %v832_v47  ;;  %940 = vst [vmem:[%s1682_s22 + $0x30] sm:$0xff] %v908_v48  ;;  %v833_v58 = vmul.f32 %v1314_v51, %v1670_v56  ;;  %v909_v59 = vmul.f32 %v1314_v51, %v1672_v57 }
 0x1d5   : > { %1335 = vtanh.f32 %v758_v50  ;;  %v760_v60 = vadd.f32 %v759_v55, %v1643_v29  ;;  %v1316_v61 = vpop.eup %1315  ;;  %873 = vst [vmem:[%s1679_s19 + $0x78] sm:$0xff] %v841_v53  ;;  %949 = vst [vmem:[%s1682_s22 + $0x78] sm:$0xff] %v917_v54 }
 0x1d6   : > { %v763_v62 = vpop.f32.mrf.mxu1  ;;  %v1318_v63 = vpop.eup %1317  ;;  %865 = vst [vmem:[%s1679_s19 + $0x38] sm:$0xff] %v833_v58  ;;  %941 = vst [vmem:[%s1682_s22 + $0x38] sm:$0xff] %v909_v59  ;;  %v834_v0 = vmul.f32 %v1316_v61, %v1663_v49  ;;  %v910_v1 = vmul.f32 %v1316_v61, %v1666_v52 }
 0x1d7   : > { %1337 = vtanh.f32 %v760_v60  ;;  %v764_v2 = vadd.f32 %v763_v62, %v1641_v27  ;;  %v1320_v3 = vpop.eup %1319  ;;  %v842_v4 = vmul.f32 %v1318_v63, %v1663_v49  ;;  %v918_v5 = vmul.f32 %v1318_v63, %v1666_v52 }
 0x1d8   : > { %v765_v6 = vpop.f32.mrf.mxu1  ;;  %v1322_v7 = vpop.eup %1321  ;;  %866 = vst [vmem:[%s1679_s19 + $0x40] sm:$0xff] %v834_v0  ;;  %942 = vst [vmem:[%s1682_s22 + $0x40] sm:$0xff] %v910_v1  ;;  %v835_v8 = vmul.f32 %v1320_v3, %v1670_v56  ;;  %v911_v9 = vmul.f32 %v1320_v3, %v1672_v57 }
 0x1d9   : > { %1339 = vtanh.f32 %v764_v2  ;;  %v766_v10 = vadd.f32 %v765_v6, %v1643_v29  ;;  %v1324_v11 = vpop.eup %1323  ;;  %874 = vst [vmem:[%s1679_s19 + $0x80] sm:$0xff] %v842_v4  ;;  %950 = vst [vmem:[%s1682_s22 + $0x80] sm:$0xff] %v918_v5  ;;  %v843_v12 = vmul.f32 %v1322_v7, %v1670_v56  ;;  %v919_v13 = vmul.f32 %v1322_v7, %v1672_v57 }
 0x1da   : > { %v767_v14 = vpop.f32.mrf.mxu1  ;;  %v1326_v15 = vpop.eup %1325  ;;  %867 = vst [vmem:[%s1679_s19 + $0x48] sm:$0xff] %v835_v8  ;;  %943 = vst [vmem:[%s1682_s22 + $0x48] sm:$0xff] %v911_v9  ;;  %v836_v16 = vmul.f32 %v1324_v11, %v1663_v49  ;;  %v912_v17 = vmul.f32 %v1324_v11, %v1666_v52 }
 0x1db   : > { %1341 = vtanh.f32 %v766_v10  ;;  %v768_v18 = vadd.f32 %v767_v14, %v1641_v27  ;;  %v1328_v19 = vpop.eup %1327  ;;  %875 = vst [vmem:[%s1679_s19 + $0x88] sm:$0xff] %v843_v12  ;;  %951 = vst [vmem:[%s1682_s22 + $0x88] sm:$0xff] %v919_v13  ;;  %v844_v20 = vmul.f32 %v1326_v15, %v1663_v49  ;;  %v920_v21 = vmul.f32 %v1326_v15, %v1666_v52 }
 0x1dc   : > { %v769_v22 = vpop.f32.mrf.mxu1  ;;  %v1330_v23 = vpop.eup %1329  ;;  %868 = vst [vmem:[%s1679_s19 + $0x50] sm:$0xff] %v836_v16  ;;  %944 = vst [vmem:[%s1682_s22 + $0x50] sm:$0xff] %v912_v17  ;;  %v837_v24 = vmul.f32 %v1328_v19, %v1670_v56  ;;  %v913_v25 = vmul.f32 %v1328_v19, %v1672_v57 }
 0x1dd   : > { %1343 = vtanh.f32 %v768_v18  ;;  %v770_v26 = vadd.f32 %v769_v22, %v1643_v29  ;;  %876 = vst [vmem:[%s1679_s19 + $0x90] sm:$0xff] %v844_v20  ;;  %952 = vst [vmem:[%s1682_s22 + $0x90] sm:$0xff] %v920_v21  ;;  %v845_v31 = vmul.f32 %v1330_v23, %v1670_v56  ;;  %v921_v28 = vmul.f32 %v1330_v23, %v1672_v57 }
 0x1de   : > { %v1332_v30 = vpop.eup %1331  ;;  %v773_v32 = vpop.f32.mrf.mxu1  ;;  %869 = vst [vmem:[%s1679_s19 + $0x58] sm:$0xff] %v837_v24  ;;  %945 = vst [vmem:[%s1682_s22 + $0x58] sm:$0xff] %v913_v25 }
 0x1df   : > { %v846_v33 = vmul.f32 %v1332_v30, %v1663_v49  ;;  %v922_v34 = vmul.f32 %v1332_v30, %v1666_v52  ;;  %1345 = vtanh.f32 %v770_v26  ;;  %v774_v35 = vadd.f32 %v773_v32, %v1641_v27  ;;  %877 = vst [vmem:[%s1679_s19 + $0x98] sm:$0xff] %v845_v31  ;;  %953 = vst [vmem:[%s1682_s22 + $0x98] sm:$0xff] %v921_v28 }
 0x1e0   : > { %v1334_v36 = vpop.eup %1333  ;;  %v775_v37 = vpop.f32.mrf.mxu1 }
 0x1e1   : > { %878 = vst [vmem:[%s1679_s19 + $0xa0] sm:$0xff] %v846_v33  ;;  %954 = vst [vmem:[%s1682_s22 + $0xa0] sm:$0xff] %v922_v34  ;;  %v847_v38 = vmul.f32 %v1334_v36, %v1670_v56  ;;  %v923_v39 = vmul.f32 %v1334_v36, %v1672_v57  ;;  %1347 = vtanh.f32 %v774_v35  ;;  %v776_v40 = vadd.f32 %v775_v37, %v1643_v29 }
 0x1e2   : > { %v1336_v41 = vpop.eup %1335  ;;  %v777_v42 = vpop.f32.mrf.mxu1 }
 0x1e3   : > { %879 = vst [vmem:[%s1679_s19 + $0xa8] sm:$0xff] %v847_v38  ;;  %955 = vst [vmem:[%s1682_s22 + $0xa8] sm:$0xff] %v923_v39  ;;  %v848_v43 = vmul.f32 %v1336_v41, %v1663_v49  ;;  %v924_v44 = vmul.f32 %v1336_v41, %v1666_v52  ;;  %1349 = vtanh.f32 %v776_v40  ;;  %v778_v45 = vadd.f32 %v777_v42, %v1641_v27 }
 0x1e4   : > { %v1338_v46 = vpop.eup %1337  ;;  %v779_v47 = vpop.f32.mrf.mxu1 }
 0x1e5   : > { %880 = vst [vmem:[%s1679_s19 + $0xb0] sm:$0xff] %v848_v43  ;;  %956 = vst [vmem:[%s1682_s22 + $0xb0] sm:$0xff] %v924_v44  ;;  %v849_v48 = vmul.f32 %v1338_v46, %v1670_v56  ;;  %v925_v50 = vmul.f32 %v1338_v46, %v1672_v57  ;;  %1351 = vtanh.f32 %v778_v45  ;;  %v780_v51 = vadd.f32 %v779_v47, %v1643_v29 }
 0x1e6   : > { %v1340_v53 = vpop.eup %1339 }
 0x1e7   : > { %881 = vst [vmem:[%s1679_s19 + $0xb8] sm:$0xff] %v849_v48  ;;  %957 = vst [vmem:[%s1682_s22 + $0xb8] sm:$0xff] %v925_v50  ;;  %v850_v27 = vmul.f32 %v1340_v53, %v1663_v49  ;;  %v926_v54 = vmul.f32 %v1340_v53, %v1666_v52  ;;  %1353 = vtanh.f32 %v780_v51 }
 0x1e8   : > { %v1342_v55 = vpop.eup %1341 }
 0x1e9   : > { %882 = vst [vmem:[%s1679_s19 + $0xc0] sm:$0xff] %v850_v27  ;;  %958 = vst [vmem:[%s1682_s22 + $0xc0] sm:$0xff] %v926_v54  ;;  %v851_v58 = vmul.f32 %v1342_v55, %v1670_v56  ;;  %v927_v59 = vmul.f32 %v1342_v55, %v1672_v57 }
 0x1ea   : > { %v1344_v29 = vpop.eup %1343 }
 0x1eb   : > { %883 = vst [vmem:[%s1679_s19 + $0xc8] sm:$0xff] %v851_v58  ;;  %959 = vst [vmem:[%s1682_s22 + $0xc8] sm:$0xff] %v927_v59  ;;  %v852_v60 = vmul.f32 %v1344_v29, %v1663_v49  ;;  %v928_v61 = vmul.f32 %v1344_v29, %v1666_v52 }
 0x1ec   : > { %v1346_v62 = vpop.eup %1345 }
 0x1ed   : > { %884 = vst [vmem:[%s1679_s19 + $0xd0] sm:$0xff] %v852_v60  ;;  %960 = vst [vmem:[%s1682_s22 + $0xd0] sm:$0xff] %v928_v61  ;;  %v853_v63 = vmul.f32 %v1346_v62, %v1670_v56  ;;  %v929_v0 = vmul.f32 %v1346_v62, %v1672_v57 }
 0x1ee   : > { %v1348_v1 = vpop.eup %1347 }
 0x1ef   : > { %885 = vst [vmem:[%s1679_s19 + $0xd8] sm:$0xff] %v853_v63  ;;  %961 = vst [vmem:[%s1682_s22 + $0xd8] sm:$0xff] %v929_v0  ;;  %v854_v2 = vmul.f32 %v1348_v1, %v1663_v49  ;;  %v930_v3 = vmul.f32 %v1348_v1, %v1666_v52 }
 0x1f0   : > { %v1350_v4 = vpop.eup %1349 }
 0x1f1   : > { %886 = vst [vmem:[%s1679_s19 + $0xe0] sm:$0xff] %v854_v2  ;;  %962 = vst [vmem:[%s1682_s22 + $0xe0] sm:$0xff] %v930_v3  ;;  %v855_v5 = vmul.f32 %v1350_v4, %v1670_v56  ;;  %v931_v6 = vmul.f32 %v1350_v4, %v1672_v57 }
 0x1f2   : > { %v1352_v7 = vpop.eup %1351 }
 0x1f3   : > { %887 = vst [vmem:[%s1679_s19 + $0xe8] sm:$0xff] %v855_v5  ;;  %963 = vst [vmem:[%s1682_s22 + $0xe8] sm:$0xff] %v931_v6  ;;  %v856_v8 = vmul.f32 %v1352_v7, %v1663_v49  ;;  %v932_v9 = vmul.f32 %v1352_v7, %v1666_v52 }
 0x1f4   : > { %v1354_v10 = vpop.eup %1353 }
 0x1f5   : > { %888 = vst [vmem:[%s1679_s19 + $0xf0] sm:$0xff] %v856_v8  ;;  %964 = vst [vmem:[%s1682_s22 + $0xf0] sm:$0xff] %v932_v9  ;;  %v857_v11 = vmul.f32 %v1354_v10, %v1670_v56  ;;  %v933_v49 = vmul.f32 %v1354_v10, %v1672_v57 }
 0x1f7   : > { %889 = vst [vmem:[%s1679_s19 + $0xf8] sm:$0xff] %v857_v11  ;;  %965 = vst [vmem:[%s1682_s22 + $0xf8] sm:$0xff] %v933_v49 }
 0x1f8   : > { %1368 = shalt.err (!%p1365_p3)
}
 0x1f9   : > { %s1369_s19 = scalar_lea.hbm %s1826_s26, 4096  ;;  %s1373_s12 = scalar_lea.hbm %s1918_s7, 8192 }
 0x1fa   : > { %p1370_p4 = scmp.ne.s32.totalorder %s1826_s26, %s1369_s19  ;;  %p1374_p9 = scmp.lt.s32.totalorder %s1826_s26, %s1918_s7 }
 0x1fb   : > { %p1375_p10 = scmp.lt.s32.totalorder %s1373_s12, %s1369_s19 }
 0x1fc   : > { %p1371_p7 = pnand %p1370_p4, %p1535_p5 }
 0x1fd   : > { %p1376_p11 = por %p1375_p10, %p1374_p9 }
 0x1fe   : > { %p1372_p8 = pneg %p1371_p7 }
 0x200   : > { %p1377_p12 = pnand %p1376_p11, %p1372_p8 }
 0x202   : > { %1380 = shalt.err (!%p1377_p12)
}
 0x203   : > { %s1449_s0 = smov 256   ;;  %s1450_s21 = smov 16  }
 0x204   : > { %1208 = dma.vmem_to_hbm [thread:$0]  (%p1535_p5), %s1829_s24, 4096, %s1826_s26, %s967_s13, %s1449_s0, %s1449_s0, %s1450_s21  }
 0x205   : > { %s972_s9 = scalar_lea.sflag [#allocation5], %s1656_s18  ;;  %s1381_s19 = scalar_lea.vmem %s1840_s10, 4096 }
 0x206   : > { %p1382_p13 = scmp.ne.s32.totalorder %s1840_s10, %s1381_s19  ;;  %s1451_s22 = smov [#allocation4]  }
 0x207   : > { %s1385_s23 = sshll.u32 %s1451_s22, 4  ;;  %s1386_s23 = int_to_ptr.vmem [resolvable:$false] %s1385_s23 }
 0x208   : > { %p1383_p0 = pnand %p1382_p13, %p1535_p5  ;;  %s1387_s12 = scalar_lea.vmem %s1386_s23, 8192 }
 0x209   : > { %p1388_p2 = scmp.lt.s32.totalorder %s1840_s10, %s1386_s23  ;;  %p1389_p3 = scmp.lt.s32.totalorder %s1387_s12, %s1381_s19 }
 0x20a   : > { %p1384_p1 = pneg %p1383_p0 }
 0x20b   : > { %p1390_p4 = por %p1389_p3, %p1388_p2 }
 0x20d   : > { %p1391_p7 = pnand %p1390_p4, %p1384_p1 }
 0x20f   : > { %1394 = shalt.err (!%p1391_p7)
}
 0x210   : > { %s1395_s24 = scalar_lea.hbm %s1838_s20, 4096  ;;  %s1399_s13 = scalar_lea.hbm %s1919_s8, 8192 }
 0x211   : > { %p1396_p8 = scmp.ne.s32.totalorder %s1838_s20, %s1395_s24  ;;  %p1400_p11 = scmp.lt.s32.totalorder %s1838_s20, %s1919_s8 }
 0x212   : > { %p1401_p12 = scmp.lt.s32.totalorder %s1399_s13, %s1395_s24 }
 0x213   : > { %p1397_p9 = pnand %p1396_p8, %p1535_p5 }
 0x214   : > { %p1402_p13 = por %p1401_p12, %p1400_p11 }
 0x215   : > { %p1398_p10 = pneg %p1397_p9 }
 0x217   : > { %p1403_p0 = pnand %p1402_p13, %p1398_p10 }
 0x219   : > { %1406 = shalt.err (!%p1403_p0)
}
 0x21a   : > { %1209 = dma.vmem_to_hbm [thread:$0]  (%p1535_p5), %s1840_s10, 4096, %s1838_s20, %s972_s9, %s1449_s0, %s1449_s0, %s1450_s21  }
 0x21b PF: > { %p1219_p1 = scmp.ge.s32.totalorder %s1445_s30, 2  ;;  %s1018_s19 = sand.u32 1, %s1433_s27  }
 0x21c   : > { %s1019_s22 = scalar_lea.sflag [#allocation3], %s1018_s19 }
 0x21d   : > { %p1213_p2 = pnand %p1219_p1, %p1539_p6 }
 0x21f   : > { %p1214_p3 = pneg %p1213_p2 }
 0x221   : > { %1424 = dma.done.wait (%p1214_p3), %s1019_s22, 4096  }
 0x222   : > { %1426 = vsyncadd (%p1214_p3), %s1019_s22, 4294963200  ;;  %s1028_s23 = scalar_lea.sflag [#allocation5], %s1018_s19 }
 0x223   : > { %1428 = dma.done.wait (%p1214_p3), %s1028_s23, 4096  }
 0x224   : > { %1430 = vsyncadd (%p1214_p3), %s1028_s23, 4294963200  ;;  %p22_p5 = scmp.ge.s32.totalorder %s1522_s11, 4   ;;  %s1924_s27 = smov %s1437_s28 }
 0x225   : > { %s1925_s28 = smov %s1441_s29  ;;  %s1926_s29 = smov %s1533_s14 }
 0x226   : > { %s1927_s30 = smov %s1522_s11  ;;  %24 = sbr.rel (!%p22_p5) target bundleno = 7 (0x7), region = 100 }
 0x22b   :  { %1033 = vsyncpa [#allocation3], 1 }
 0x22c   :  { %1035 = vsyncpa [#allocation3 + $0x1], 1 }
 0x22d   :  { %1036 = vsyncpa [#allocation5], 1 }
 0x22e   :  { %1038 = vsyncpa [#allocation5 + $0x1], 1 }

</bundles_post_ra>
